<compile_context>
chip_gen: v7x
topology: tpu7x:2x2x1
jax: 0.10.0
libtpu: 0.0.40
codegen_flags: <defaults>
</compile_context>

<pallas_src>
import functools

import jax
import jax.numpy as jnp
from jax import lax
from jax.experimental import pallas as pl
from jax.experimental.pallas import tpu as pltpu


def _gaussian_smearing_kernel(dist_ref, o_ref, *, start, delta, coeff, num_gaussians):
    # dist_ref: (tile_e, 1) f32,  o_ref: (tile_e, G) f32
    d = dist_ref[...]                                              # (tile_e, 1)
    g = lax.broadcasted_iota(jnp.int32, (1, num_gaussians), 1)     # (1, G)
    off = jnp.float32(start) + jnp.float32(delta) * g.astype(jnp.float32)
    diff = d - off                                                 # VPU broadcast -> (tile_e, G)
    o_ref[...] = jnp.exp(coeff * (diff * diff)).astype(o_ref.dtype)  # exp on EUP


def gaussian_smearing(dist, *, start=0.0, stop=5.0, num_gaussians=50, tile_e=8192):
    """dist: (E,) or (E, 1) float array. Returns (E, num_gaussians) float32."""
    dist = jnp.asarray(dist, jnp.float32).reshape(-1, 1)
    E = dist.shape[0]
    G = int(num_gaussians)

    # NOTE: num_gaussians == 1 divides by zero, matching the torch module's own
    # failure mode (offset[1] - offset[0]).
    delta = (float(stop) - float(start)) / (G - 1)
    coeff = -0.5 / (delta * delta)

    # ---- tile sizing / VMEM budget ------------------------------------------
    # Per-step VMEM (f32, lane-padded, double-buffered):
    #   dist column block : tile_e * 128 * 4 B
    #   output block      : tile_e * round_up(G, 128) * 4 B
    g_pad = ((G + 127) // 128) * 128
    bytes_per_row = 2 * (g_pad + 128) * 4            # x2 for double buffering
    vmem_budget = 40 << 20                           # conservative: v7x has 64 MiB/TC
    tile_cap_vmem = max(8, (vmem_budget // bytes_per_row) // 8 * 8)
    # Keep >= 2 grid steps when E allows it, so "parallel" can shard over v7x's 2 TCs.
    tile_cap_2steps = ((pl.cdiv(E, 2) + 7) // 8) * 8
    tile_e = max(8, min(int(tile_e), tile_cap_vmem, tile_cap_2steps))

    grid = (pl.cdiv(E, tile_e),)
    vmem_limit = int(min(max(bytes_per_row * tile_e + (4 << 20), 16 << 20), 64 << 20))

    cost = pl.CostEstimate(
        flops=3 * E * G,                    # sub + mul + mul per output element
        transcendentals=E * G,              # one exp per output element
        bytes_accessed=4 * (E + E * G),     # dist + output (f32); offsets generated in-kernel
    )

    kernel = functools.partial(
        _gaussian_smearing_kernel,
        start=float(start), delta=float(delta), coeff=float(coeff), num_gaussians=G,
    )

    return pl.pallas_call(
        kernel,
        out_shape=jax.ShapeDtypeStruct((E, G), jnp.float32),
        grid_spec=pl.GridSpec(
            grid=grid,
            in_specs=[pl.BlockSpec((tile_e, 1), lambda i: (i, 0))],     # dist tile
            out_specs=pl.BlockSpec((tile_e, G), lambda i: (i, 0)),
        ),
        compiler_params=pltpu.CompilerParams(
            dimension_semantics=("parallel",),
            vmem_limit_bytes=vmem_limit,
        ),
        cost_estimate=cost,
    )(dist)


def reference(dist, *, start=0.0, stop=5.0, num_gaussians=50):
    # Faithful to the torch module: linspace offsets, coeff from the first gap.
    dist = jnp.asarray(dist, jnp.float32).reshape(-1, 1)
    offset = jnp.linspace(start, stop, num_gaussians, dtype=jnp.float32)
    delta = (stop - start) / (num_gaussians - 1)
    coeff = -0.5 / (delta * delta)
    diff = dist - offset[None, :]
    return jnp.exp(coeff * diff * diff)


if __name__ == "__main__":
    key = jax.random.PRNGKey(0)
    num_gaussians = 50   # module default

    ok = True
    for E in (100, 777):  # small shapes; exercises masked partial blocks + 2-step grid
        k = jax.random.fold_in(key, E)
        dist = jax.random.uniform(k, (E,), jnp.float32, 0.0, 5.0)

        out = gaussian_smearing(dist, start=0.0, stop=5.0, num_gaussians=num_gaussians)
        out = jax.block_until_ready(out)

        ref = reference(dist, start=0.0, stop=5.0, num_gaussians=num_gaussians)
        assert out.shape == (E, num_gaussians), out.shape
        # Tolerance covers the few-ulp difference between linspace offsets and the
        # in-kernel start + delta*i construction.
        ok = ok and bool(jnp.allclose(out, ref, atol=2e-5, rtol=2e-5))
        assert ok, float(jnp.max(jnp.abs(out - ref)))

    print("KERNEL_OK")
</pallas_src>

<mosaic_0001>
module attributes {stable_mosaic.version = 11 : i64} {
  func.func @_gaussian_smearing_kernel(%arg0: i32, %arg1: memref<56x1xf32, #tpu.memory_space<vmem>>, %arg2: memref<56x50xf32, #tpu.memory_space<vmem>>) attributes {dimension_semantics = [#tpu.dimension_semantics<parallel>], iteration_bounds = array<i64: 2>, scalar_prefetch = 0 : i64, scratch_operands = 0 : i64, tpu.core_type = #tpu.core_type<tc>, window_params = [{transform_indices = @transform_0, window_bounds = array<i64: 56, 1>}, {transform_indices = @transform_1, window_bounds = array<i64: 56, 50>}]} {
    %c0 = arith.constant 0 : index
    %c0_0 = arith.constant 0 : index
    %0 = vector.load %arg1[%c0, %c0_0] : memref<56x1xf32, #tpu.memory_space<vmem>>, vector<56x1xf32>
    %1 = tpu.iota {dimensions = array<i32: 1>} : vector<1x50xi32>
    %2 = arith.sitofp %1 : vector<1x50xi32> to vector<1x50xf32>
    %cst = arith.constant 0.10204082 : f32
    %3 = vector.broadcast %cst : f32 to vector<1x50xf32>
    %4 = arith.mulf %3, %2 : vector<1x50xf32>
    %cst_1 = arith.constant 0.000000e+00 : f32
    %5 = vector.broadcast %cst_1 : f32 to vector<1x50xf32>
    %6 = arith.addf %5, %4 : vector<1x50xf32>
    %7 = vector.broadcast %0 : vector<56x1xf32> to vector<56x50xf32>
    %8 = vector.broadcast %6 : vector<1x50xf32> to vector<56x50xf32>
    %9 = arith.subf %7, %8 : vector<56x50xf32>
    %10 = arith.mulf %9, %9 : vector<56x50xf32>
    %cst_2 = arith.constant -4.802000e+01 : f32
    %11 = vector.broadcast %cst_2 : f32 to vector<56x50xf32>
    %12 = arith.mulf %11, %10 : vector<56x50xf32>
    %13 = math.exp %12 : vector<56x50xf32>
    %c0_3 = arith.constant 0 : index
    %c0_4 = arith.constant 0 : index
    %14 = vector.load %arg2[%c0_3, %c0_4] : memref<56x50xf32, #tpu.memory_space<vmem>>, vector<56x50xf32>
    tpu.vector_store %arg2[%c0_3, %c0_4], %13 {strides = array<i32>} : memref<56x50xf32, #tpu.memory_space<vmem>>, vector<56x50xf32>,
    return
  }
  func.func @transform_0(%arg0: i32) -> (i32, i32) {
    %c0_i32 = arith.constant 0 : i32
    %c0_i32_0 = arith.constant 0 : i32
    return %arg0, %c0_i32 : i32, i32
  }
  func.func @transform_1(%arg0: i32) -> (i32, i32) {
    %c0_i32 = arith.constant 0 : i32
    %c0_i32_0 = arith.constant 0 : i32
    return %arg0, %c0_i32 : i32, i32
  }
}

</mosaic_0001>

<bundles_post_ra>
// kernel: tpu_custom_call.1
= control target key start
LH: loop header
LB: loop body
LE: loop exit
PB: predicated region body
PF: predicated region fallthrough
CT: control target
= control target key end

     0   :  { %s697_s6 = smov 0   ;;  %s699_s7 = smov 0   ;;  %s807_s0 = inlined_call_operand.vmem [shape: f32[100,1], index: 0, kind: input, shape index: {}]   ;;  %s808_s1 = inlined_call_operand.vmem [shape: f32[100,50], index: 1, kind: output, shape index: {}]  }
   0x1   :  { %s701_s8 = smov 0  }
   0x2 LB: > { %s710_s9 = sadd.s32 4294967295, %s652_s8   ;;  %s712_s10 = sadd.s32 1, %s652_s8   ;;  %s652_s8 = sphi %s701_s8, %s815_s8   ;;  %s648_s7 = sphi %s699_s7, %s814_s7   ;;  %s644_s6 = sphi %s697_s6, %s813_s6  }
   0x3   : > { %s41_s11 = ssub.s32 %s652_s8, %s712_s10  ;;  %s44_s12 = sadd.s32 1, %s648_s7 }
   0x4   : > { %p42_p0 = scmp.eq.s32.totalorder %s41_s11, 0  ;;  %p54_p1 = scmp.ne.s32.totalorder %s648_s7, %s644_s6 }
   0x5   : > { %p55_p2 = scmp.eq.s32.totalorder %s710_s9, 1  ;;  %p472_p3 = scmp.ge.s32.totalorder %s652_s8, 1 }
   0x6   : > { %s720_s13 = scalar_select %p42_p0, %s648_s7, %s44_s12  }
   0x7   : > { %p722_p4 = por %p55_p2, %p54_p1  ;;  %p96_p5 = scmp.lt.s32.totalorder %s652_s8, 3 }
   0x9   : > { %p97_p6 = pnand %p472_p3, %p96_p5 }
   0xa   : > { %s727_s15 = smul.u32 (!%p97_p6), 7, %s710_s9  ;;  %v686_v0 = vmov (!%p97_p6), 0   ;;  %v145_v8 = vlaneseq (!%p97_p6)  ;;  %s116_s21 = sand.u32 (!%p97_p6), 1, %s644_s6   ;;  %vm220_vm0 = vcmask (!%p97_p6), 408576  }
   0xb   : > { %100 = sbr.rel (%p97_p6) target bundleno = 244 (0xf4), region = 24  ;;  %579 = vset.pattern.permute.xlu1 (!%p97_p6), %v686_v0  ;;  %578 = vset.pattern.permute.xlu0 (!%p97_p6), %v686_v0 }
   0xc   : > { %p124_p7 = scmp.lt.s32.totalorder (!%p97_p6), %s727_s15, 12  ;;  %v146_v9 = vand.u32 (!%p97_p6), 127, %v145_v8  ;;  %s487_s22 = smul.u32 (!%p97_p6), 56, %s116_s21 }
   0xe   : > { %v147_v10 = vcvt.s32.f32 (!%p97_p6), %v146_v9  ;;  %s735_s23 = scalar_lea.vmem (!%p97_p6), [#allocation2], %s487_s22  }
  0x10   : > { %v148_v11 = vmul.f32 (!%p97_p6), 0.10204082, %v147_v10 }
  0x12   : > { %s125_s16 = scalar_select %p124_p7, %s727_s15, 12 }
  0x13   : > { %s236_s24 = ssub.s32 (%p722_p4), 13, %s727_s15  ;;  %s486_s25 = smul.u32 (%p722_p4), 56, %s710_s9 }
  0x14   : > { %s473_s17 = sshll.u32 %s125_s16, 3  ;;  %p237_p8 = scmp.lt.s32.totalorder (%p722_p4), %s236_s24, 7 }
  0x15   : > { %s127_s20 = scalar_lea.vmem %s807_s0, %s473_s17  ;;  %s758_s28 = scalar_lea.vmem (%p722_p4), %s808_s1, %s486_s25  }
  0x16   : > { %v140_v1 = vld [vmem:[%s127_s20 + $0x10] sm:$0xff]  ;;  %v138_v2 = vld [vmem:[%s127_s20] sm:$0xff]  ;;  %v141_v3 = vld [vmem:[%s127_s20 + $0x18] sm:$0xff] }
  0x17   : > { %162 = vperm.xlu1 %579, %v140_v1   ;;  %152 = vperm.xlu0 %578, %v138_v2   ;;  %v139_v4 = vld [vmem:[%s127_s20 + $0x8] sm:$0xff]  ;;  %v142_v6 = vld [vmem:[%s127_s20 + $0x20] sm:$0xff]  ;;  %v144_v7 = vld [vmem:[%s127_s20 + $0x30] sm:$0xff] }
  0x18   : > { %v143_v5 = vld [vmem:[%s127_s20 + $0x28] sm:$0xff] }
  0x1b   : > { %167 = vperm.xlu1 %579, %v141_v3   ;;  %157 = vperm.xlu0 %578, %v139_v4  }
  0x1f   : > { %177 = vperm.xlu1 %579, %v143_v5   ;;  %172 = vperm.xlu0 %578, %v142_v6  }
  0x23   : > { %182 = vperm.xlu0 %578, %v144_v7  }
  0x96   : > { %v163_v12 = vpop.permute.xlu1 %162  ;;  %v153_v13 = vpop.permute.xlu0 %152 }
  0x97   : > { %v187_v14 = vsub.f32 %v163_v12, %v148_v11  ;;  %v185_v15 = vsub.f32 %v153_v13, %v148_v11 }
  0x99   : > { %v194_v16 = vmul.f32 %v187_v14, %v187_v14  ;;  %v192_v17 = vmul.f32 %v185_v15, %v185_v15 }
  0x9a   : > { %v168_v18 = vpop.permute.xlu1 %167  ;;  %v158_v19 = vpop.permute.xlu0 %157 }
  0x9b   : > { %v201_v20 = vmul.f32 -48.02, %v194_v16  ;;  %v199_v21 = vmul.f32 -48.02, %v192_v17  ;;  %v188_v22 = vsub.f32 %v168_v18, %v148_v11  ;;  %v186_v23 = vsub.f32 %v158_v19, %v148_v11 }
  0x9d   : > { %v210_v24 = vmul.f32 1.442695, %v201_v20  ;;  %v206_v25 = vmul.f32 1.442695, %v199_v21  ;;  %v195_v26 = vmul.f32 %v188_v22, %v188_v22  ;;  %v193_v27 = vmul.f32 %v186_v23, %v186_v23 }
  0x9e   : > { %v178_v28 = vpop.permute.xlu1 %177  ;;  %v173_v29 = vpop.permute.xlu0 %172 }
  0x9f   : > { %580 = vpow2.f32 %v210_v24  ;;  %v202_v30 = vmul.f32 -48.02, %v195_v26  ;;  %v200_v31 = vmul.f32 -48.02, %v193_v27  ;;  %v190_v32 = vsub.f32 %v178_v28, %v148_v11 }
  0xa0   : > { %582 = vpow2.f32 %v206_v25  ;;  %v189_v33 = vsub.f32 %v173_v29, %v148_v11 }
  0xa1   : > { %v212_v34 = vmul.f32 1.442695, %v202_v30  ;;  %v208_v35 = vmul.f32 1.442695, %v200_v31  ;;  %v197_v36 = vmul.f32 %v190_v32, %v190_v32 }
  0xa2   : > { %v196_v37 = vmul.f32 %v189_v33, %v189_v33  ;;  %v183_v38 = vpop.permute.xlu0 %182 }
  0xa3   : > { %584 = vpow2.f32 %v212_v34  ;;  %v204_v39 = vmul.f32 -48.02, %v197_v36  ;;  %v191_v40 = vsub.f32 %v183_v38, %v148_v11 }
  0xa4   : > { %586 = vpow2.f32 %v208_v35  ;;  %v203_v41 = vmul.f32 -48.02, %v196_v37 }
  0xa5   : > { %v216_v42 = vmul.f32 1.442695, %v204_v39  ;;  %v198_v43 = vmul.f32 %v191_v40, %v191_v40 }
  0xa6   : > { %v214_v44 = vmul.f32 1.442695, %v203_v41 }
  0xa7   : > { %588 = vpow2.f32 %v216_v42  ;;  %v205_v45 = vmul.f32 -48.02, %v198_v43 }
  0xa8   : > { %590 = vpow2.f32 %v214_v44 }
  0xa9   : > { %v581_v46 = vpop.eup %580  ;;  %v218_v47 = vmul.f32 1.442695, %v205_v45 }
  0xaa   : > { %v583_v48 = vpop.eup %582  ;;  %223 = vst.msk [vmem:[%s735_s23 + $0x10] sm:$0xff] %vm220_vm0, %v581_v46 }
  0xab   : > { %221 = vst.msk [vmem:[%s735_s23] sm:$0xff] %vm220_vm0, %v583_v48  ;;  %592 = vpow2.f32 %v218_v47 }
  0xad   : > { %v585_v49 = vpop.eup %584 }
  0xae   : > { %v587_v50 = vpop.eup %586  ;;  %224 = vst.msk [vmem:[%s735_s23 + $0x18] sm:$0xff] %vm220_vm0, %v585_v49 }
  0xaf   : > { %222 = vst.msk [vmem:[%s735_s23 + $0x8] sm:$0xff] %vm220_vm0, %v587_v50 }
  0xb0   : > { %234 = sbr.rel (!%p722_p4) target bundleno = 244 (0xf4), region = 28 }
  0xb1   : > { %v589_v51 = vpop.eup %588 }
  0xb2   : > { %v591_v52 = vpop.eup %590  ;;  %226 = vst.msk [vmem:[%s735_s23 + $0x28] sm:$0xff] %vm220_vm0, %v589_v51 }
  0xb3   : > { %225 = vst.msk [vmem:[%s735_s23 + $0x20] sm:$0xff] %vm220_vm0, %v591_v52 }
  0xb5   : > { %v593_v53 = vpop.eup %592 }
  0xb6   : > { %227 = vst.msk [vmem:[%s735_s23 + $0x30] sm:$0xff] %vm220_vm0, %v593_v53 }
  0xb7   : > { %s817_s24 = smov (!%p237_p8, %s236_s24), 7 }
  0xb8   : > { %s474_s29 = sshll.u32 %s817_s24, 7 }
  0xb9   : > { %p477_p9 = scmp.eq.s32.totalorder %s474_s29, 0 }
  0xba   : > { %594 = sdivrem.u32 (!%p477_p9), %s817_s24, 7 }
  0xbb   : > { %245 = sbr.rel (%p477_p9) target bundleno = 244 (0xf4), region = 32 }
  0xc3   : > { %s764_s30 = spop.drf %594 }
  0xc4   : > { %p478_p10 = scmp.le.s32.totalorder %s764_s30, 0 }
  0xc5   : > { %s810_s2 = smov (!%p478_p10), %s758_s28  ;;  %s811_s3 = smov (!%p478_p10), %s735_s23 }
  0xc6   : > { %425 = sbr.rel (%p478_p10) target bundleno = 215 (0xd7), region = 108  ;;  %s773_s4 = smov (!%p478_p10), 0  }
  0xc7   : > { %s775_s5 = smov (!%p478_p10), 0  }
  0xcd LB: >> { %v321_v54 = vld [vmem:[%s660_s3] sm:$0xff]  ;;  %v323_v55 = vld [vmem:[%s660_s3 + $0x8] sm:$0xff]  ;;  %v325_v56 = vld [vmem:[%s660_s3 + $0x10] sm:$0xff]  ;;  %s335_s6 = sadd.s32 1, %s664_s4  ;;  %s315_s5 = sadd.s32 1, %s668_s5   ;;  %s668_s5 = sphi %s775_s5, %s315_s5   ;;  %s664_s4 = sphi %s773_s4, %s812_s4   ;;  %s660_s3 = sphi %s811_s3, %s340_s3   ;;  %s656_s2 = sphi %s810_s2, %s341_s2  }
  0xce   : >> { %322 = vst [vmem:[%s656_s2] sm:$0xff] %v321_v54  ;;  %324 = vst [vmem:[%s656_s2 + $0x8] sm:$0xff] %v323_v55  ;;  %v327_v57 = vld [vmem:[%s660_s3 + $0x18] sm:$0xff]  ;;  %v329_v58 = vld [vmem:[%s660_s3 + $0x20] sm:$0xff]  ;;  %p336_p11 = scmp.ge.s32.totalorder %s335_s6, %s764_s30  ;;  %p314_p12 = scmp.ge.s32.totalorder %s315_s5, %s764_s30 }
  0xcf   : >> { %326 = vst [vmem:[%s656_s2 + $0x10] sm:$0xff] %v325_v56  ;;  %v331_v59 = vld [vmem:[%s660_s3 + $0x28] sm:$0xff]  ;;  %328 = vst [vmem:[%s656_s2 + $0x18] sm:$0xff] %v327_v57  ;;  %v333_v60 = vld [vmem:[%s660_s3 + $0x30] sm:$0xff] }
  0xd0   : >> { %330 = vst [vmem:[%s656_s2 + $0x20] sm:$0xff] %v329_v58  ;;  %332 = vst [vmem:[%s656_s2 + $0x28] sm:$0xff] %v331_v59  ;;  %s819_s6 = smov (%p336_p11, %s335_s6), 0  ;;  %317 = sbr.rel (!%p314_p12) target bundleno = 205 (0xcd), region = 114 }
  0xd1   : >> { %334 = vst [vmem:[%s656_s2 + $0x30] sm:$0xff] %v333_v60  ;;  %s338_s8 = smul.u32 56, %s819_s6  ;;  %s812_s4 = smov %s819_s6 }
  0xd3   : >> { %s340_s3 = scalar_lea.vmem %s735_s23, %s338_s8 [#allocation2]   ;;  %s341_s2 = scalar_lea.vmem %s758_s28, %s338_s8  }
  0xd7 PF: > { %596 = sdivrem.u32 %s817_s24, 7 }
  0xd8   : > { %s479_s9 = smul.u32 56, %s764_s30 }
  0xda   : > { %s346_s11 = scalar_lea.vmem %s735_s23, %s479_s9 [#allocation2]   ;;  %s348_s12 = scalar_lea.vmem %s758_s28, %s479_s9  }
  0xe0   : > { %s597_s14 = spop.drf %596 }
  0xe1   : > { %p481_p13 = scmp.le.s32.totalorder %s597_s14, 0 }
  0xe2   : > { %s670_s15 = smov (!%p481_p13), %s348_s12   ;;  %s674_s16 = smov (!%p481_p13), %s346_s11  }
  0xe3   : > { %439 = sbr.rel (%p481_p13) target bundleno = 244 (0xf4), region = 119  ;;  %s678_s17 = smov (!%p481_p13), 0  }
  0xe4   : > { %s682_s18 = smov (!%p481_p13), 0  }
  0xea LB: >> { %v358_v61 = vld [vmem:[%s676_s16] sm:$0xff]  ;;  %s360_s19 = sadd.s32 1, %s680_s17  ;;  %s352_s18 = sadd.s32 1, %s684_s18   ;;  %s684_s18 = sphi %s682_s18, %s352_s18   ;;  %s680_s17 = sphi %s678_s17, %s679_s17   ;;  %s676_s16 = sphi %s674_s16, %s365_s16   ;;  %s672_s15 = sphi %s670_s15, %s366_s15  }
  0xeb   : >> { %359 = vst [vmem:[%s672_s15] sm:$0xff] %v358_v61  ;;  %p361_p0 = scmp.ge.s32.totalorder %s360_s19, %s597_s14  ;;  %p351_p1 = scmp.ge.s32.totalorder %s352_s18, %s597_s14 }
  0xed   : >> { %s821_s19 = smov (%p361_p0, %s360_s19), 0  ;;  %354 = sbr.rel (!%p351_p1) target bundleno = 234 (0xea), region = 125 }
  0xee   : >> { %s482_s20 = sshll.u32 %s821_s19, 3  ;;  %s679_s17 = smov %s821_s19  }
  0xef   : >> { %s365_s16 = scalar_lea.vmem %s346_s11, %s482_s20 [#allocation2]   ;;  %s366_s15 = scalar_lea.vmem %s348_s12, %s482_s20  }
  0xf4 PF: > { %p8_p2 = scmp.ge.s32.totalorder %s712_s10, 4   ;;  %s813_s6 = smov %s648_s7 }
  0xf5   : > { %s814_s7 = smov %s720_s13  ;;  %s815_s8 = smov %s712_s10 }
  0xf6   :  { %10 = sbr.rel (!%p8_p2) target bundleno = 2 (0x2), region = 136 }

</bundles_post_ra>
